<compile_context>
chip_gen: v7x
topology: tpu7x:2x2x1
jax: 0.10.0
libtpu: 0.0.40
codegen_flags: <defaults>
</compile_context>

<pallas_src>
import jax
import jax.numpy as jnp
from jax.experimental import pallas as pl
from jax.experimental.pallas import tpu as pltpu

LANES = 128


def _gauss_kernel(inv_ref, d_ref, o_ref):
    # inv_ref: SMEM (1,) f32 scalar = -0.5 / std^2
    # d_ref / o_ref: VMEM tiles (tm, 128) in the HBM storage dtype
    inv = inv_ref[0]
    d = d_ref[...].astype(jnp.float32)            # f32 compute (cast is free filler)
    o_ref[...] = jnp.exp(d * d * inv).astype(o_ref.dtype)


def _pick_tm(rows, itemsize, target_block_bytes):
    """Pick the row-tile so each block is ~target_block_bytes and the grid has >=2 steps."""
    # Sublane multiple: 8 for 4-byte dtypes, 16 for 2-byte (bf16 packed tiles).
    mult = max(8, 32 // itemsize)
    if rows <= mult:
        # Single full-extent block (block dim == array dim is exempt from divisibility).
        return rows
    cap = max(mult, (target_block_bytes // (LANES * itemsize)) // mult * mult)
    tm = min(cap, (rows // mult) * mult)
    if tm >= rows:
        # Force >=2 grid steps so "parallel" semantics can shard across both
        # TensorCores on v7x (and keep the two halves roughly balanced).
        half = ((rows + 1) // 2 + mult - 1) // mult * mult
        tm = max(mult, min(tm, half))
    return tm


def gauss_forward(d, std, *, target_block_bytes=2 << 20, min_pallas_elems=1024):
    """Elementwise gaussian: exp(d^2 / (-2 std^2)).

    d: any-shape array (f32 or bf16); std: scalar parameter (shape (1,) or ()).
    NOTE: std == 0 yields inf/NaN exactly like the PyTorch reference.
    """
    orig_shape = d.shape
    orig_dtype = d.dtype
    n = d.size

    std_f32 = jnp.asarray(std, jnp.float32).reshape(())
    inv_scalar = jnp.float32(-0.5) / (std_f32 * std_f32)

    def _jnp_path(x):
        xf = x.astype(jnp.float32)
        return jnp.exp(xf * xf * inv_scalar).astype(orig_dtype)

    # Fast path: for tiny tensors the pallas_call fixed cost dominates.
    if n < min_pallas_elems:
        return _jnp_path(d)

    flat = jnp.ravel(d)                      # contiguous reshape: free
    n_main = (n // LANES) * LANES            # lane-aligned prefix
    rows = n_main // LANES                   # >= 8 given min_pallas_elems >= 1024

    if n_main == n:
        x2d = flat.reshape(rows, LANES)      # free reshape, no padding, no copy
    else:
        # Rare unaligned case: Pallas handles the aligned prefix, jnp the tiny tail.
        x2d = flat[:n_main].reshape(rows, LANES)

    itemsize = jnp.dtype(orig_dtype).itemsize
    tm = _pick_tm(rows, itemsize, target_block_bytes)
    grid = (pl.cdiv(rows, tm),)              # partial last block is masked by Pallas

    inv = inv_scalar.reshape(1)

    out2d = pl.pallas_call(
        _gauss_kernel,
        out_shape=jax.ShapeDtypeStruct((rows, LANES), orig_dtype),
        grid_spec=pltpu.PrefetchScalarGridSpec(
            num_scalar_prefetch=0,
            grid=grid,
            in_specs=[
                pl.BlockSpec(memory_space=pltpu.SMEM),        # inv scalar
                pl.BlockSpec((tm, LANES), lambda i: (i, 0)),  # d tile
            ],
            out_specs=pl.BlockSpec((tm, LANES), lambda i: (i, 0)),
        ),
        compiler_params=pltpu.CompilerParams(
            dimension_semantics=("parallel",),
        ),
        cost_estimate=pl.CostEstimate(
            flops=2 * n_main,
            transcendentals=n_main,
            bytes_accessed=2 * n_main * itemsize,
        ),
    )(inv, x2d)

    if n_main == n:
        return out2d.reshape(orig_shape)

    out_tail = _jnp_path(flat[n_main:])
    return jnp.concatenate([out2d.reshape(-1), out_tail]).reshape(orig_shape)


def _reference(x, std_value):
    xf = x.astype(jnp.float32)
    return jnp.exp(jnp.square(xf) / (-2.0 * std_value * std_value)).astype(x.dtype)


if __name__ == "__main__":
    key = jax.random.PRNGKey(0)
    # Module init: gauss(std) holds a single scalar parameter of shape (1,)
    std_value = 2.0
    std = jnp.array([std_value], dtype=jnp.float32)

    k1, k2, k3, k4 = jax.random.split(key, 4)

    # 1) Main test: NCHW-like "distance" input, lane-aligned -> Pallas, no pad, grid >= 2.
    x1 = jax.random.normal(k1, (2, 4, 16, 16), dtype=jnp.float32)
    y1 = jax.block_until_ready(gauss_forward(x1, std))
    assert y1.shape == x1.shape and y1.dtype == x1.dtype
    assert jnp.max(jnp.abs(y1 - _reference(x1, std_value))) < 1e-6

    # 2) Non-lane-aligned size -> Pallas on aligned prefix + jnp tail (no full-tensor pad).
    x2 = jax.random.normal(k2, (5, 300), dtype=jnp.float32)
    y2 = jax.block_until_ready(gauss_forward(x2, std))
    assert y2.shape == x2.shape and y2.dtype == x2.dtype
    assert jnp.max(jnp.abs(y2 - _reference(x2, std_value))) < 1e-6

    # 3) Tiny input -> fast (non-Pallas) path.
    x3 = jax.random.normal(k3, (3, 5), dtype=jnp.float32)
    y3 = jax.block_until_ready(gauss_forward(x3, std))
    assert y3.shape == x3.shape and y3.dtype == x3.dtype
    assert jnp.max(jnp.abs(y3 - _reference(x3, std_value))) < 1e-6

    # 4) bf16 storage / f32 compute path (tm rounded to 16-row multiples).
    x4 = x1.astype(jnp.bfloat16)
    y4 = jax.block_until_ready(gauss_forward(x4, std))
    assert y4.shape == x4.shape and y4.dtype == jnp.bfloat16
    assert jnp.max(jnp.abs(y4.astype(jnp.float32)
                           - _reference(x4, std_value).astype(jnp.float32))) < 2e-2

    # 5) Moderately larger aligned input: exercises the >=2-step grid and a masked
    #    partial last block (rows=256 -> tm=128, grid=(2,)).
    x5 = jax.random.normal(k4, (4, 8, 32, 32), dtype=jnp.float32)
    y5 = jax.block_until_ready(gauss_forward(x5, std))
    assert y5.shape == x5.shape and y5.dtype == x5.dtype
    assert jnp.max(jnp.abs(y5 - _reference(x5, std_value))) < 1e-6

    print("KERNEL_OK")
</pallas_src>

<mosaic_0001>
module attributes {stable_mosaic.version = 11 : i64} {
  func.func @_gauss_kernel(%arg0: i32, %arg1: memref<1xf32, #tpu.memory_space<smem>>, %arg2: memref<8x128xf32, #tpu.memory_space<vmem>>, %arg3: memref<8x128xf32, #tpu.memory_space<vmem>>) attributes {dimension_semantics = [#tpu.dimension_semantics<parallel>], iteration_bounds = array<i64: 2>, scalar_prefetch = 0 : i64, scratch_operands = 0 : i64, tpu.core_type = #tpu.core_type<tc>, window_params = [{transform_indices = @transform_0, window_bounds = array<i64: 1>}, {transform_indices = @transform_1, window_bounds = array<i64: 8, 128>}, {transform_indices = @transform_2, window_bounds = array<i64: 8, 128>}]} {
    %c0 = arith.constant 0 : index
    %0 = memref.load %arg1[%c0] : memref<1xf32, #tpu.memory_space<smem>>
    %c0_0 = arith.constant 0 : index
    %c0_1 = arith.constant 0 : index
    %1 = vector.load %arg2[%c0_0, %c0_1] : memref<8x128xf32, #tpu.memory_space<vmem>>, vector<8x128xf32>
    %2 = arith.mulf %1, %1 : vector<8x128xf32>
    %3 = vector.broadcast %0 : f32 to vector<8x128xf32>
    %4 = arith.mulf %2, %3 : vector<8x128xf32>
    %5 = math.exp %4 : vector<8x128xf32>
    %c0_2 = arith.constant 0 : index
    %c0_3 = arith.constant 0 : index
    %6 = vector.load %arg3[%c0_2, %c0_3] : memref<8x128xf32, #tpu.memory_space<vmem>>, vector<8x128xf32>
    tpu.vector_store %arg3[%c0_2, %c0_3], %5 {strides = array<i32>} : memref<8x128xf32, #tpu.memory_space<vmem>>, vector<8x128xf32>,
    return
  }
  func.func @transform_0(%arg0: i32) -> i32 {
    %c0_i32 = arith.constant 0 : i32
    %c0_i32_0 = arith.constant 0 : i32
    return %c0_i32 : i32
  }
  func.func @transform_1(%arg0: i32) -> (i32, i32) {
    %c0_i32 = arith.constant 0 : i32
    %c0_i32_0 = arith.constant 0 : i32
    return %arg0, %c0_i32 : i32, i32
  }
  func.func @transform_2(%arg0: i32) -> (i32, i32) {
    %c0_i32 = arith.constant 0 : i32
    %c0_i32_0 = arith.constant 0 : i32
    return %arg0, %c0_i32 : i32, i32
  }
}

</mosaic_0001>

<bundles_post_ra>
// kernel: tpu_custom_call.1
= control target key start
LH: loop header
LB: loop body
LE: loop exit
PB: predicated region body
PF: predicated region fallthrough
CT: control target
= control target key end

     0   :  { %s591_s0 = inlined_call_operand.<no memory space> [shape: f32[1], index: 0, kind: input, shape index: {}]   ;;  %s592_s1 = inlined_call_operand.hbm [shape: f32[16,128], index: 1, kind: input, shape index: {}]   ;;  %s593_s2 = inlined_call_operand.hbm [shape: f32[16,128], index: 2, kind: output, shape index: {}]  }
   0x1   :  { %7 = sst [smem:[#allocation2]] %s591_s0 }
   0x2   :  { %8 = vsyncpa [#allocation4], 0 }
   0x3   :  { %10 = vsyncpa [#allocation4 + $0x1], 0 }
   0x4   :  { %11 = vsyncpa [#allocation5], 0 }
   0x5   :  { %13 = vsyncpa [#allocation5 + $0x1], 0  ;;  %s430_s11 = smov 0   ;;  %s432_s12 = smov 0  }
   0x6   :  { %s434_s13 = smov 0   ;;  %s436_s14 = smov 0  }
   0x7 LB: > { %s451_s0 = sadd.s32 4294967295, %s408_s14   ;;  %s252_s15 = sadd.s32 4294967294, %s408_s14   ;;  %s408_s14 = sphi %s436_s14, %s608_s14   ;;  %s404_s13 = sphi %s434_s13, %s607_s13   ;;  %s400_s12 = sphi %s432_s12, %s606_s12   ;;  %s396_s11 = sphi %s430_s11, %s605_s11  }
   0x8   : > { %s455_s16 = sadd.s32 1, %s408_s14   ;;  %s47_s17 = sadd.s32 1, %s404_s13 }
   0x9   : > { %s44_s18 = ssub.s32 %s408_s14, %s455_s16  ;;  %p54_p0 = scmp.ne.s32.totalorder %s404_s13, %s400_s12 }
   0xa   : > { %p45_p1 = scmp.eq.s32.totalorder %s44_s18, 0  ;;  %p55_p2 = scmp.eq.s32.totalorder %s408_s14, 0 }
   0xb   : > { %p60_p3 = scmp.ne.s32.totalorder %s400_s12, %s396_s11  ;;  %p61_p4 = scmp.eq.s32.totalorder %s451_s0, 0 }
   0xc   : > { %s467_s19 = scalar_select %p45_p1, %s404_s13, %s47_s17  }
   0xd   : > { %p469_p5 = por %p55_p2, %p54_p0  ;;  %p473_p6 = por %p61_p4, %p60_p3 }
   0xe   : > { %p84_p7 = scmp.eq.s32.totalorder %s451_s0, 1  ;;  %p90_p8 = scmp.eq.s32.totalorder %s252_s15, 1 }
   0xf   : > { %p276_p10 = scmp.lt.s32.totalorder %s408_s14, 2  ;;  %s113_s24 = sand.u32 1, %s404_s13  }
  0x10   : > { %p480_p11 = por %p84_p7, %p54_p0  ;;  %p484_p12 = por %p90_p8, %p60_p3 }
  0x11   : > { %s256_s25 = sshll.u32 %s408_s14, 7  ;;  %s255_s26 = sshll.u32 %s113_s24, 3 }
  0x12   : > { %s597_s22 = scalar_select %p480_p11, 1, 0 }
  0x13   : > { %s598_s23 = scalar_select %p484_p12, 1, 0 }
  0x14   : > { %s493_s29 = scalar_lea.hbm %s592_s1, %s256_s25  ;;  %s117_s30 = scalar_lea.vmem [#allocation3], %s255_s26 }
  0x15   : > { %s124_s3 = sshll.u32 %s117_s30, 4  ;;  %p497_p13 = pnand %p276_p10, %p469_p5  ;;  %s501_s3 = int_to_ptr.vmem [resolvable:$true] %s124_s3 }
  0x16   : > { %s114_s5 = scalar_lea.sflag [#allocation4], %s113_s24  ;;  %s312_s6 = scalar_lea.hbm %s493_s29, 128 }
  0x17   : > { %p313_p2 = scmp.ne.s32.totalorder %s493_s29, %s312_s6  ;;  %p314_p3 = pneg %p497_p13 }
  0x18   : > { %s317_s9 = scalar_lea.hbm %s592_s1, 256  ;;  %p318_p5 = scmp.lt.u32.totalorder %s493_s29, %s592_s1 }
  0x19   : > { %p315_p4 = pnand %p314_p3, %p313_p2  ;;  %p319_p8 = scmp.lt.u32.totalorder %s317_s9, %s312_s6 }
  0x1a   : > { %p321_p9 = scmp.lt.u32.totalorder %s312_s6, %s493_s29 }
  0x1b   : > { %p316_p7 = pneg %p315_p4  ;;  %p320_p10 = por %p319_p8, %p318_p5 }
  0x1d   : > { %p322_p0 = por %p321_p9, %p320_p10 }
  0x1f   : > { %p323_p1 = pnand %p322_p0, %p316_p7 }
  0x21   : > { %326 = shalt.err (!%p323_p1)
}
  0x22   : > { %s327_s17 = scalar_lea.vmem %s501_s3, 128  ;;  %s410_s18 = smov [#allocation3]  }
  0x23   : > { %p328_p2 = scmp.ne.s32.totalorder %s501_s3, %s327_s17  ;;  %s332_s20 = sshll.u32 %s410_s18, 4  ;;  %s333_s20 = int_to_ptr.vmem [resolvable:$false] %s332_s20 }
  0x24   : > { %s334_s24 = scalar_lea.vmem %s333_s20, 256  ;;  %p335_p11 = scmp.lt.s32.totalorder %s501_s3, %s333_s20 }
  0x25   : > { %p330_p4 = pnand %p328_p2, %p314_p3  ;;  %p336_p5 = scmp.lt.s32.totalorder %s334_s24, %s327_s17 }
  0x27   : > { %p331_p12 = pneg %p330_p4  ;;  %p337_p8 = por %p336_p5, %p335_p11 }
  0x29   : > { %p338_p9 = pnand %p337_p8, %p331_p12 }
  0x2b   : > { %341 = shalt.err (!%p338_p9)
}
  0x2c   : > { %271 = dma.hbm_to_vmem [thread:$0]  (!%p497_p13), %s493_s29, 128, %s501_s3, %s114_s5  }
  0x2d   : > { %p600_p0 = scmp.lt.s32.totalorder %s408_s14, 3  ;;  %p601_p1 = scmp.ge.s32.totalorder %s408_s14, 1 }
  0x2f   : > { %p130_p3 = pnand %p601_p1, %p600_p0 }
  0x30   : > { %s535_s25 = sand.u32 (!%p130_p3), 1, %s400_s12  }
  0x31   : > { %133 = sbr.rel (%p130_p3) target bundleno = 93 (0x5d), region = 28  ;;  %s258_s26 = sshll.u32 (!%p130_p3), %s535_s25, 3 }
  0x32   : > { %s136_s27 = scalar_lea.sflag (!%p130_p3), [#allocation4], %s535_s25  ;;  %s139_s28 = scalar_lea.vmem (!%p130_p3), [#allocation3], %s258_s26 }
  0x38   : > { %387 = dma.done.wait (%p473_p6), %s136_s27, 128  }
  0x39   : > { %389 = vsyncadd (%p473_p6), %s136_s27, 4294967168  ;;  %s160_s29 = sld [smem:[#allocation2]]  ;;  %v161_v0 = vld [vmem:[%s139_s28] sm:$0xff]  ;;  %s159_s30 = scalar_lea.vmem [#allocation6], %s258_s26 }
  0x3a   : > { %v162_v2 = vmul.f32 %v161_v0, %v161_v0  ;;  %s182_s3 = sshll.u32 %s159_s30, 4  ;;  %s261_s4 = sshll.u32 %s451_s0, 7  ;;  %s544_s3 = int_to_ptr.vmem [resolvable:$true] %s182_s3 }
  0x3b   : > { %s549_s21 = scalar_lea.hbm %s593_s2, %s261_s4  ;;  %s169_s7 = scalar_lea.sflag [#allocation5], %s535_s25 }
  0x3c   : > { %s342_s8 = scalar_lea.vmem %s544_s3, 128  ;;  %p602_p11 = scmp.ne.s32.totalorder %s597_s22, 0 }
  0x3d   : > { %p343_p6 = scmp.ne.s32.totalorder %s544_s3, %s342_s8  ;;  %s411_s9 = smov [#allocation6]  }
  0x3e   : > { %s346_s0 = sshll.u32 %s411_s9, 4  ;;  %s347_s0 = int_to_ptr.vmem [resolvable:$false] %s346_s0 }
  0x3f   : > { %v163_v1 = vstv %s160_s29  ;;  %p344_p12 = pnand %p343_p6, %p602_p11  ;;  %s348_s10 = scalar_lea.vmem %s347_s0, 256 }
  0x40   : > { %v164_v3 = vmul.f32 %v163_v1, %v162_v2  ;;  %p349_p7 = scmp.lt.s32.totalorder %s544_s3, %s347_s0  ;;  %p350_p10 = scmp.lt.s32.totalorder %s348_s10, %s342_s8 }
  0x41   : > { %p345_p13 = pneg %p344_p12 }
  0x42   : > { %v165_v4 = vmul.f32 1.442695, %v164_v3  ;;  %p351_p2 = por %p350_p10, %p349_p7 }
  0x44   : > { %310 = vpow2.f32 %v165_v4  ;;  %p352_p4 = pnand %p351_p2, %p345_p13 }
  0x4e   : > { %v311_v5 = vpop.eup %310 }
  0x4f   : > { %167 = vst [vmem:[%s159_s30] sm:$0xff] %v311_v5 }
  0x50   : > { %355 = shalt.err (!%p352_p4)
}
  0x51   : > { %s356_s15 = scalar_lea.hbm %s549_s21, 128  ;;  %s360_s20 = scalar_lea.hbm %s593_s2, 256 }
  0x52   : > { %p357_p5 = scmp.ne.s32.totalorder %s549_s21, %s356_s15  ;;  %p361_p0 = scmp.lt.u32.totalorder %s549_s21, %s593_s2 }
  0x53   : > { %p362_p1 = scmp.lt.u32.totalorder %s360_s20, %s356_s15  ;;  %p364_p6 = scmp.lt.u32.totalorder %s356_s15, %s549_s21 }
  0x54   : > { %p358_p8 = pnand %p357_p5, %p602_p11 }
  0x55   : > { %p363_p3 = por %p362_p1, %p361_p0 }
  0x56   : > { %p359_p9 = pneg %p358_p8 }
  0x57   : > { %p365_p12 = por %p364_p6, %p363_p3 }
  0x59   : > { %p366_p13 = pnand %p365_p12, %p359_p9 }
  0x5b   : > { %369 = shalt.err (!%p366_p13)
}
  0x5c   : > { %266 = dma.vmem_to_hbm [thread:$0]  (%p602_p11), %s544_s3, 128, %s549_s21, %s169_s7  }
  0x5d PF: > { %s194_s26 = sand.u32 1, %s396_s11   ;;  %p603_p7 = scmp.ne.s32.totalorder %s598_s23, 0 }
  0x5e   : > { %p604_p10 = scmp.ge.s32.totalorder %s408_s14, 2  ;;  %s195_s27 = scalar_lea.sflag [#allocation5], %s194_s26 }
  0x60   : > { %p273_p2 = pnand %p604_p10, %p603_p7 }
  0x62   : > { %391 = dma.done.wait (!%p273_p2), %s195_s27, 128  }
  0x63   : > { %393 = vsyncadd (!%p273_p2), %s195_s27, 4294967168  ;;  %p16_p4 = scmp.ge.s32.totalorder %s455_s16, 4   ;;  %s605_s11 = smov %s400_s12 }
  0x64   : > { %s606_s12 = smov %s404_s13  ;;  %s607_s13 = smov %s467_s19 }
  0x65   : > { %s608_s14 = smov %s455_s16  ;;  %18 = sbr.rel (!%p16_p4) target bundleno = 7 (0x7), region = 73 }
  0x6c   :  { %200 = vsyncpa [#allocation4], 1 }
  0x6d   :  { %202 = vsyncpa [#allocation4 + $0x1], 1 }
  0x6e   :  { %203 = vsyncpa [#allocation5], 1 }
  0x6f   :  { %205 = vsyncpa [#allocation5 + $0x1], 1 }

</bundles_post_ra>
